<compile_context>
chip_gen: v5e
topology: v5e:2x2
jax: 0.10.0
libtpu: 0.0.40
codegen_flags: <defaults>
</compile_context>

<pallas_src>
import functools

import jax
import jax.numpy as jnp
from jax import lax
from jax.experimental import pallas as pl
from jax.experimental.pallas import tpu as pltpu

LN_EPS = 1e-5  # matches nn.LayerNorm default


def _resblock_kernel(x_ref, w1_ref, w2_ref, wid_ref, g1_ref, b1_ref, g2_ref, b2_ref,
                     o_ref, xpad_ref, hpad_ref, *,
                     TB, L, K, dilation, pad, padtop, id_conv):
    f32 = jnp.float32
    bf16 = jnp.bfloat16

    def stage_padded(val, buf_ref):
        # Bulk store at an 8-aligned sublane offset (unmasked vst when L % 8 == 0).
        # Only the 2*pad boundary rows are zero-filled, every step (scratch persists
        # across grid iterations and the batch axis may be split across TensorCores).
        if pad > 0:
            c = buf_ref.shape[2]
            buf_ref[:, padtop - pad:padtop, :] = jnp.zeros((TB, pad, c), f32)
            buf_ref[:, padtop + L:padtop + L + pad, :] = jnp.zeros((TB, pad, c), f32)
        buf_ref[:, padtop:padtop + L, :] = val

    def conv(buf_ref, w_ref):
        # Dilated Conv1d as K tap matmuls on the MXU: bf16 operands, f32 accumulate.
        # All TB batch elements are flattened into one (TB*L, Cin) operand so each tap
        # is a single big matmul (reshape is layout-free: L % 8 == 0 or TB == 1).
        cin = buf_ref.shape[2]
        cout = w_ref.shape[2]
        acc = jnp.zeros((TB * L, cout), f32)
        for k in range(K):
            start = padtop - pad + k * dilation            # static python int
            tap = buf_ref[:, start:start + L, :].astype(bf16).reshape(TB * L, cin)
            acc = acc + jnp.dot(tap, w_ref[k], preferred_element_type=f32)
        return acc.reshape(TB, L, cout)

    def layernorm(h, g_ref, b_ref):
        # torch LayerNorm(dim_series): normalize over the series axis (sublane axis
        # here), per (batch, channel); gamma/beta are per-series-position, shape (L,1).
        mean = jnp.mean(h, axis=1, keepdims=True)
        cent = h - mean
        var = jnp.mean(cent * cent, axis=1, keepdims=True)
        return cent * lax.rsqrt(var + LN_EPS) * g_ref[...][None] + b_ref[...][None]

    x = x_ref[...].astype(f32)                             # (TB, L, Cin)

    # ---- residual link: conv1 -> LN -> ReLU -> conv2 -> LN ----
    stage_padded(x, xpad_ref)
    h = conv(xpad_ref, w1_ref)                             # (TB, L, Cout) f32
    h = jnp.maximum(layernorm(h, g1_ref, b1_ref), 0.0)
    stage_padded(h, hpad_ref)
    res = layernorm(conv(hpad_ref, w2_ref), g2_ref, b2_ref)

    # ---- identity link ----
    if id_conv:
        cin = x.shape[2]
        cout = wid_ref.shape[1]
        identity = jnp.dot(x.astype(bf16).reshape(TB * L, cin), wid_ref[...],
                           preferred_element_type=f32).reshape(TB, L, cout)
    else:
        identity = x                                       # nn.Identity (Cin == Cout)

    # ---- after-addition activation ----
    o_ref[...] = jnp.maximum(identity + res, 0.0).astype(o_ref.dtype)


def resblock_forward(x_ncl, params, *, kernel_size, dilation):
    B, Cin, L = x_ncl.shape
    Cout = params['w1'].shape[0]
    K = kernel_size
    assert K % 2 == 1, "odd kernel_size required to preserve dim_series"
    pad = (K // 2) * dilation
    padtop = ((pad + 7) // 8) * 8       # 8-aligned staging offset for the bulk store
    padL = padtop + L + pad

    # NCL -> channels-last (B, L, Cin). Single transpose each way; in a stacked-ResBlock
    # network activations would stay channels-last and these would disappear.
    x_blc = jnp.transpose(x_ncl, (0, 2, 1))

    # torch conv weights (Cout, Cin, K) -> (K, Cin, Cout), pre-cast to bf16 (MXU operands)
    w1 = jnp.transpose(params['w1'], (2, 1, 0)).astype(jnp.bfloat16)
    w2 = jnp.transpose(params['w2'], (2, 1, 0)).astype(jnp.bfloat16)
    id_conv = params.get('wid') is not None
    if id_conv:
        wid = jnp.transpose(params['wid'][:, :, 0], (1, 0)).astype(jnp.bfloat16)
    else:  # in_channels == out_channels -> nn.Identity (no conv in the kernel)
        assert Cin == Cout
        wid = jnp.zeros((1, 1), jnp.bfloat16)              # dummy, unused
    g1 = params['g1'].reshape(L, 1).astype(jnp.float32)
    b1 = params['b1'].reshape(L, 1).astype(jnp.float32)
    g2 = params['g2'].reshape(L, 1).astype(jnp.float32)
    b2 = params['b2'].reshape(L, 1).astype(jnp.float32)

    # ---- batch tile: biggest TB (<=8) that keeps scratch + double-buffered blocks
    # inside a conservative VMEM budget; TB=1 if L unaligned (keeps reshapes layout-free)
    itemsize = x_ncl.dtype.itemsize
    per_elem = 4 * padL * (Cin + Cout) + 2 * itemsize * L * (Cin + Cout)
    TB = int(max(1, min(8, B, (10 << 20) // max(1, per_elem))))
    if L % 8 != 0:
        TB = 1
    Bp = ((B + TB - 1) // TB) * TB
    if Bp != B:
        x_blc = jnp.pad(x_blc, ((0, Bp - B), (0, 0), (0, 0)))

    kernel = functools.partial(_resblock_kernel, TB=TB, L=L, K=K, dilation=dilation,
                               pad=pad, padtop=padtop, id_conv=id_conv)

    # advisory cost estimate for XLA scheduling around the custom call
    flops = (2 * B * L * Cout * (K * Cin + K * Cout + (Cin if id_conv else 0))
             + 20 * B * L * Cout)
    bytes_accessed = (B * L * Cin * itemsize + B * L * Cout * itemsize
                      + int(w1.size + w2.size + wid.size) * 2 + 4 * 4 * L)
    cost = pl.CostEstimate(flops=int(flops), transcendentals=int(2 * B * Cout),
                           bytes_accessed=int(bytes_accessed))

    # per-step VMEM budget (input/output blocks double-buffered) + staging scratch
    weight_bytes = 2 * int(w1.size + w2.size + wid.size) + 4 * 4 * L
    blk_bytes = TB * itemsize * L * (Cin + Cout)
    scratch_bytes = 4 * TB * padL * (Cin + Cout)
    vmem_limit = int(min(64 << 20,
                         max(16 << 20,
                             2 * (blk_bytes + weight_bytes) + scratch_bytes + (2 << 20))))

    # NOTE: with tiny Cout the (TB, L, Cout) output block is lane-sparse; at realistic
    # channel widths (multiples of 128) it becomes lane-dense automatically.
    out_blc = pl.pallas_call(
        kernel,
        out_shape=jax.ShapeDtypeStruct((Bp, L, Cout), x_ncl.dtype),
        grid=(Bp // TB,),
        in_specs=[
            pl.BlockSpec((TB, L, Cin), lambda b: (b, 0, 0)),    # x, one batch tile
            pl.BlockSpec((K, Cin, Cout), lambda b: (0, 0, 0)),  # w1 (resident)
            pl.BlockSpec((K, Cout, Cout), lambda b: (0, 0, 0)), # w2 (resident)
            pl.BlockSpec(wid.shape, lambda b: (0, 0)),          # wid / dummy (resident)
            pl.BlockSpec((L, 1), lambda b: (0, 0)),             # gamma1
            pl.BlockSpec((L, 1), lambda b: (0, 0)),             # beta1
            pl.BlockSpec((L, 1), lambda b: (0, 0)),             # gamma2
            pl.BlockSpec((L, 1), lambda b: (0, 0)),             # beta2
        ],
        out_specs=pl.BlockSpec((TB, L, Cout), lambda b: (b, 0, 0)),
        scratch_shapes=[
            pltpu.VMEM((TB, padL, Cin), jnp.float32),           # padded-x staging
            pltpu.VMEM((TB, padL, Cout), jnp.float32),          # padded-h staging
        ],
        compiler_params=pltpu.CompilerParams(
            dimension_semantics=("parallel",),
            vmem_limit_bytes=vmem_limit,
        ),
        cost_estimate=cost,
    )(x_blc, w1, w2, wid, g1, b1, g2, b2)

    if Bp != B:
        out_blc = out_blc[:B]
    return jnp.transpose(out_blc, (0, 2, 1))   # back to NCL


def init_params(key, Cin, Cout, K, L):
    k1, k2, k3 = jax.random.split(key, 3)
    bound1 = 1.0 / (Cin * K) ** 0.5
    bound2 = 1.0 / (Cout * K) ** 0.5
    boundi = 1.0 / Cin ** 0.5
    return {
        'w1': jax.random.uniform(k1, (Cout, Cin, K), jnp.float32, -bound1, bound1),
        'w2': jax.random.uniform(k2, (Cout, Cout, K), jnp.float32, -bound2, bound2),
        'wid': jax.random.uniform(k3, (Cout, Cin, 1), jnp.float32, -boundi, boundi),
        'g1': jnp.ones((L,), jnp.float32), 'b1': jnp.zeros((L,), jnp.float32),
        'g2': jnp.ones((L,), jnp.float32), 'b2': jnp.zeros((L,), jnp.float32),
    }


def resblock_reference(x, p, *, kernel_size, dilation):
    pad = (kernel_size // 2) * dilation

    def conv(h, w, padding):
        return lax.conv_general_dilated(h, w, (1,), [(padding, padding)],
                                        rhs_dilation=(dilation,),
                                        dimension_numbers=('NCH', 'OIH', 'NCH'))

    def ln(h, g, b):
        m = h.mean(-1, keepdims=True)
        v = ((h - m) ** 2).mean(-1, keepdims=True)
        return (h - m) / jnp.sqrt(v + LN_EPS) * g + b

    h = conv(x, p['w1'], pad)
    h = jnp.maximum(ln(h, p['g1'], p['b1']), 0.0)
    h = conv(h, p['w2'], pad)
    residual = ln(h, p['g2'], p['b2'])
    identity = conv(x, p['wid'], 0) if p.get('wid') is not None else x
    return jnp.maximum(identity + residual, 0.0)


if __name__ == "__main__":
    B, Cin, Cout, L = 2, 4, 8, 16          # dim_series = 16
    K, DIL = 3, 1                          # size_kernel = 3, dilation = 1

    key = jax.random.PRNGKey(0)
    kx, kp, kx2, kp2 = jax.random.split(key, 4)
    x = jax.random.normal(kx, (B, Cin, L), jnp.float32)    # PyTorch NCL input
    params = init_params(kp, Cin, Cout, K, L)

    fwd = jax.jit(functools.partial(resblock_forward, kernel_size=K, dilation=DIL))
    out = jax.block_until_ready(fwd(x, params))
    ref = resblock_reference(x, params, kernel_size=K, dilation=DIL)
    assert out.shape == (B, Cout, L)
    # bf16 MXU operands -> relaxed tolerance vs the f32 reference
    assert jnp.allclose(out, ref, rtol=5e-2, atol=5e-2), "mismatch vs JAX reference (dil=1)"

    # dilated variant (checks the in-kernel boundary handling for dilation > 1)
    fwd2 = jax.jit(functools.partial(resblock_forward, kernel_size=K, dilation=2))
    out2 = jax.block_until_ready(fwd2(x, params))
    ref2 = resblock_reference(x, params, kernel_size=K, dilation=2)
    assert jnp.allclose(out2, ref2, rtol=5e-2, atol=5e-2), "mismatch vs JAX reference (dil=2)"

    # in_channels == out_channels -> identity link is nn.Identity (no 1x1 conv path)
    x_sq = jax.random.normal(kx2, (B, Cout, L), jnp.float32)
    params_sq = init_params(kp2, Cout, Cout, K, L)
    params_sq['wid'] = None
    fwd3 = jax.jit(functools.partial(resblock_forward, kernel_size=K, dilation=DIL))
    out3 = jax.block_until_ready(fwd3(x_sq, params_sq))
    ref3 = resblock_reference(x_sq, params_sq, kernel_size=K, dilation=DIL)
    assert jnp.allclose(out3, ref3, rtol=5e-2, atol=5e-2), "mismatch vs JAX reference (identity)"

    print("KERNEL_OK")
</pallas_src>

<mosaic_0001>
module attributes {stable_mosaic.version = 11 : i64} {
  func.func @_resblock_kernel(%arg0: i32, %arg1: memref<2x16x4xf32, #tpu.memory_space<vmem>>, %arg2: memref<3x4x8xbf16, #tpu.memory_space<vmem>>, %arg3: memref<3x8x8xbf16, #tpu.memory_space<vmem>>, %arg4: memref<4x8xbf16, #tpu.memory_space<vmem>>, %arg5: memref<16x1xf32, #tpu.memory_space<vmem>>, %arg6: memref<16x1xf32, #tpu.memory_space<vmem>>, %arg7: memref<16x1xf32, #tpu.memory_space<vmem>>, %arg8: memref<16x1xf32, #tpu.memory_space<vmem>>, %arg9: memref<2x16x8xf32, #tpu.memory_space<vmem>>, %arg10: memref<2x25x4xf32, #tpu.memory_space<vmem>>, %arg11: memref<2x25x8xf32, #tpu.memory_space<vmem>>) attributes {dimension_semantics = [#tpu.dimension_semantics<parallel>], iteration_bounds = array<i64: 1>, scalar_prefetch = 0 : i64, scratch_operands = 2 : i64, tpu.core_type = #tpu.core_type<tc>, window_params = [{transform_indices = @transform_0, window_bounds = array<i64: 2, 16, 4>}, {pipeline_mode = #tpu.pipeline_mode<synchronous>, transform_indices = @transform_1, window_bounds = array<i64: 3, 4, 8>}, {pipeline_mode = #tpu.pipeline_mode<synchronous>, transform_indices = @transform_2, window_bounds = array<i64: 3, 8, 8>}, {pipeline_mode = #tpu.pipeline_mode<synchronous>, transform_indices = @transform_3, window_bounds = array<i64: 4, 8>}, {pipeline_mode = #tpu.pipeline_mode<synchronous>, transform_indices = @transform_4, window_bounds = array<i64: 16, 1>}, {pipeline_mode = #tpu.pipeline_mode<synchronous>, transform_indices = @transform_5, window_bounds = array<i64: 16, 1>}, {pipeline_mode = #tpu.pipeline_mode<synchronous>, transform_indices = @transform_6, window_bounds = array<i64: 16, 1>}, {pipeline_mode = #tpu.pipeline_mode<synchronous>, transform_indices = @transform_7, window_bounds = array<i64: 16, 1>}, {transform_indices = @transform_8, window_bounds = array<i64: 2, 16, 8>}]} {
    %c0 = arith.constant 0 : index
    %c0_0 = arith.constant 0 : index
    %c0_1 = arith.constant 0 : index
    %0 = vector.load %arg1[%c0, %c0_0, %c0_1] : memref<2x16x4xf32, #tpu.memory_space<vmem>>, vector<2x16x4xf32>
    %cst = arith.constant 0.000000e+00 : f32
    %1 = vector.broadcast %cst : f32 to vector<2x1x4xf32>
    %c0_2 = arith.constant 0 : index
    %c7 = arith.constant 7 : index
    %c0_3 = arith.constant 0 : index
    %2 = vector.load %arg10[%c0_2, %c7, %c0_3] : memref<2x25x4xf32, #tpu.memory_space<vmem>>, vector<2x1x4xf32>
    tpu.vector_store %arg10[%c0_2, %c7, %c0_3], %1 {strides = array<i32>} : memref<2x25x4xf32, #tpu.memory_space<vmem>>, vector<2x1x4xf32>,
    %cst_4 = arith.constant 0.000000e+00 : f32
    %3 = vector.broadcast %cst_4 : f32 to vector<2x1x4xf32>
    %c0_5 = arith.constant 0 : index
    %c24 = arith.constant 24 : index
    %c0_6 = arith.constant 0 : index
    %4 = vector.load %arg10[%c0_5, %c24, %c0_6] : memref<2x25x4xf32, #tpu.memory_space<vmem>>, vector<2x1x4xf32>
    tpu.vector_store %arg10[%c0_5, %c24, %c0_6], %3 {strides = array<i32>} : memref<2x25x4xf32, #tpu.memory_space<vmem>>, vector<2x1x4xf32>,
    %c0_7 = arith.constant 0 : index
    %c8 = arith.constant 8 : index
    %c0_8 = arith.constant 0 : index
    %5 = vector.load %arg10[%c0_7, %c8, %c0_8] : memref<2x25x4xf32, #tpu.memory_space<vmem>>, vector<2x16x4xf32>
    tpu.vector_store %arg10[%c0_7, %c8, %c0_8], %0 {strides = array<i32>} : memref<2x25x4xf32, #tpu.memory_space<vmem>>, vector<2x16x4xf32>,
    %cst_9 = arith.constant 0.000000e+00 : f32
    %6 = vector.broadcast %cst_9 : f32 to vector<32x8xf32>
    %c0_10 = arith.constant 0 : index
    %c7_11 = arith.constant 7 : index
    %c0_12 = arith.constant 0 : index
    %7 = vector.load %arg10[%c0_10, %c7_11, %c0_12] : memref<2x25x4xf32, #tpu.memory_space<vmem>>, vector<2x16x4xf32>
    %8 = arith.truncf %7 : vector<2x16x4xf32> to vector<2x16x4xbf16>
    %9 = vector.shape_cast %8 : vector<2x16x4xbf16> to vector<32x4xbf16>
    %c0_13 = arith.constant 0 : index
    %c0_14 = arith.constant 0 : index
    %c0_15 = arith.constant 0 : index
    %10 = vector.load %arg2[%c0_13, %c0_14, %c0_15] : memref<3x4x8xbf16, #tpu.memory_space<vmem>>, vector<1x4x8xbf16>
    %11 = vector.shape_cast %10 : vector<1x4x8xbf16> to vector<4x8xbf16>
    %cst_16 = arith.constant dense<0.000000e+00> : vector<32x8xf32>
    %12 = tpu.matmul %9, %11, %cst_16 {dimension_numbers = #tpu.dot_dimension_numbers<[1], [0], [0], [1], [0, 0, 1, 1], [], []>} : vector<32x4xbf16>, vector<4x8xbf16>, vector<32x8xf32> -> vector<32x8xf32>
    %13 = arith.addf %6, %12 : vector<32x8xf32>
    %c0_17 = arith.constant 0 : index
    %c8_18 = arith.constant 8 : index
    %c0_19 = arith.constant 0 : index
    %14 = vector.load %arg10[%c0_17, %c8_18, %c0_19] : memref<2x25x4xf32, #tpu.memory_space<vmem>>, vector<2x16x4xf32>
    %15 = arith.truncf %14 : vector<2x16x4xf32> to vector<2x16x4xbf16>
    %16 = vector.shape_cast %15 : vector<2x16x4xbf16> to vector<32x4xbf16>
    %c1 = arith.constant 1 : index
    %c0_20 = arith.constant 0 : index
    %c0_21 = arith.constant 0 : index
    %17 = vector.load %arg2[%c1, %c0_20, %c0_21] : memref<3x4x8xbf16, #tpu.memory_space<vmem>>, vector<1x4x8xbf16>
    %18 = vector.shape_cast %17 : vector<1x4x8xbf16> to vector<4x8xbf16>
    %cst_22 = arith.constant dense<0.000000e+00> : vector<32x8xf32>
    %19 = tpu.matmul %16, %18, %cst_22 {dimension_numbers = #tpu.dot_dimension_numbers<[1], [0], [0], [1], [0, 0, 1, 1], [], []>} : vector<32x4xbf16>, vector<4x8xbf16>, vector<32x8xf32> -> vector<32x8xf32>
    %20 = arith.addf %13, %19 : vector<32x8xf32>
    %c0_23 = arith.constant 0 : index
    %c9 = arith.constant 9 : index
    %c0_24 = arith.constant 0 : index
    %21 = vector.load %arg10[%c0_23, %c9, %c0_24] : memref<2x25x4xf32, #tpu.memory_space<vmem>>, vector<2x16x4xf32>
    %22 = arith.truncf %21 : vector<2x16x4xf32> to vector<2x16x4xbf16>
    %23 = vector.shape_cast %22 : vector<2x16x4xbf16> to vector<32x4xbf16>
    %c2 = arith.constant 2 : index
    %c0_25 = arith.constant 0 : index
    %c0_26 = arith.constant 0 : index
    %24 = vector.load %arg2[%c2, %c0_25, %c0_26] : memref<3x4x8xbf16, #tpu.memory_space<vmem>>, vector<1x4x8xbf16>
    %25 = vector.shape_cast %24 : vector<1x4x8xbf16> to vector<4x8xbf16>
    %cst_27 = arith.constant dense<0.000000e+00> : vector<32x8xf32>
    %26 = tpu.matmul %23, %25, %cst_27 {dimension_numbers = #tpu.dot_dimension_numbers<[1], [0], [0], [1], [0, 0, 1, 1], [], []>} : vector<32x4xbf16>, vector<4x8xbf16>, vector<32x8xf32> -> vector<32x8xf32>
    %27 = arith.addf %20, %26 : vector<32x8xf32>
    %28 = vector.shape_cast %27 : vector<32x8xf32> to vector<2x16x8xf32>
    %cst_28 = arith.constant dense<0.000000e+00> : vector<2x8xf32>
    %29 = vector.multi_reduction <add>, %28, %cst_28 [1] : vector<2x16x8xf32> to vector<2x8xf32>
    %30 = vector.shape_cast %29 : vector<2x8xf32> to vector<2x1x8xf32>
    %cst_29 = arith.constant 1.600000e+01 : f32
    %31 = vector.broadcast %cst_29 : f32 to vector<2x1x8xf32>
    %32 = arith.divf %30, %31 : vector<2x1x8xf32>
    %33 = vector.broadcast %32 : vector<2x1x8xf32> to vector<2x16x8xf32>
    %34 = arith.subf %28, %33 : vector<2x16x8xf32>
    %35 = arith.mulf %34, %34 : vector<2x16x8xf32>
    %cst_30 = arith.constant dense<0.000000e+00> : vector<2x8xf32>
    %36 = vector.multi_reduction <add>, %35, %cst_30 [1] : vector<2x16x8xf32> to vector<2x8xf32>
    %37 = vector.shape_cast %36 : vector<2x8xf32> to vector<2x1x8xf32>
    %cst_31 = arith.constant 1.600000e+01 : f32
    %38 = vector.broadcast %cst_31 : f32 to vector<2x1x8xf32>
    %39 = arith.divf %37, %38 : vector<2x1x8xf32>
    %cst_32 = arith.constant 9.99999974E-6 : f32
    %40 = vector.broadcast %cst_32 : f32 to vector<2x1x8xf32>
    %41 = arith.addf %39, %40 : vector<2x1x8xf32>
    %42 = math.rsqrt %41 : vector<2x1x8xf32>
    %43 = vector.broadcast %42 : vector<2x1x8xf32> to vector<2x16x8xf32>
    %44 = arith.mulf %34, %43 : vector<2x16x8xf32>
    %c0_33 = arith.constant 0 : index
    %c0_34 = arith.constant 0 : index
    %45 = vector.load %arg5[%c0_33, %c0_34] : memref<16x1xf32, #tpu.memory_space<vmem>>, vector<16x1xf32>
    %46 = vector.shape_cast %45 : vector<16x1xf32> to vector<1x16x1xf32>
    %47 = vector.broadcast %46 : vector<1x16x1xf32> to vector<2x16x8xf32>
    %48 = arith.mulf %44, %47 : vector<2x16x8xf32>
    %c0_35 = arith.constant 0 : index
    %c0_36 = arith.constant 0 : index
    %49 = vector.load %arg6[%c0_35, %c0_36] : memref<16x1xf32, #tpu.memory_space<vmem>>, vector<16x1xf32>
    %50 = vector.shape_cast %49 : vector<16x1xf32> to vector<1x16x1xf32>
    %51 = vector.broadcast %50 : vector<1x16x1xf32> to vector<2x16x8xf32>
    %52 = arith.addf %48, %51 : vector<2x16x8xf32>
    %cst_37 = arith.constant 0.000000e+00 : f32
    %53 = vector.broadcast %cst_37 : f32 to vector<2x16x8xf32>
    %54 = arith.maximumf %52, %53 : vector<2x16x8xf32>
    %cst_38 = arith.constant 0.000000e+00 : f32
    %55 = vector.broadcast %cst_38 : f32 to vector<2x1x8xf32>
    %c0_39 = arith.constant 0 : index
    %c7_40 = arith.constant 7 : index
    %c0_41 = arith.constant 0 : index
    %56 = vector.load %arg11[%c0_39, %c7_40, %c0_41] : memref<2x25x8xf32, #tpu.memory_space<vmem>>, vector<2x1x8xf32>
    tpu.vector_store %arg11[%c0_39, %c7_40, %c0_41], %55 {strides = array<i32>} : memref<2x25x8xf32, #tpu.memory_space<vmem>>, vector<2x1x8xf32>,
    %cst_42 = arith.constant 0.000000e+00 : f32
    %57 = vector.broadcast %cst_42 : f32 to vector<2x1x8xf32>
    %c0_43 = arith.constant 0 : index
    %c24_44 = arith.constant 24 : index
    %c0_45 = arith.constant 0 : index
    %58 = vector.load %arg11[%c0_43, %c24_44, %c0_45] : memref<2x25x8xf32, #tpu.memory_space<vmem>>, vector<2x1x8xf32>
    tpu.vector_store %arg11[%c0_43, %c24_44, %c0_45], %57 {strides = array<i32>} : memref<2x25x8xf32, #tpu.memory_space<vmem>>, vector<2x1x8xf32>,
    %c0_46 = arith.constant 0 : index
    %c8_47 = arith.constant 8 : index
    %c0_48 = arith.constant 0 : index
    %59 = vector.load %arg11[%c0_46, %c8_47, %c0_48] : memref<2x25x8xf32, #tpu.memory_space<vmem>>, vector<2x16x8xf32>
    tpu.vector_store %arg11[%c0_46, %c8_47, %c0_48], %54 {strides = array<i32>} : memref<2x25x8xf32, #tpu.memory_space<vmem>>, vector<2x16x8xf32>,
    %cst_49 = arith.constant 0.000000e+00 : f32
    %60 = vector.broadcast %cst_49 : f32 to vector<32x8xf32>
    %c0_50 = arith.constant 0 : index
    %c7_51 = arith.constant 7 : index
    %c0_52 = arith.constant 0 : index
    %61 = vector.load %arg11[%c0_50, %c7_51, %c0_52] : memref<2x25x8xf32, #tpu.memory_space<vmem>>, vector<2x16x8xf32>
    %62 = arith.truncf %61 : vector<2x16x8xf32> to vector<2x16x8xbf16>
    %63 = vector.shape_cast %62 : vector<2x16x8xbf16> to vector<32x8xbf16>
    %c0_53 = arith.constant 0 : index
    %c0_54 = arith.constant 0 : index
    %c0_55 = arith.constant 0 : index
    %64 = vector.load %arg3[%c0_53, %c0_54, %c0_55] : memref<3x8x8xbf16, #tpu.memory_space<vmem>>, vector<1x8x8xbf16>
    %65 = vector.shape_cast %64 : vector<1x8x8xbf16> to vector<8x8xbf16>
    %cst_56 = arith.constant dense<0.000000e+00> : vector<32x8xf32>
    %66 = tpu.matmul %63, %65, %cst_56 {dimension_numbers = #tpu.dot_dimension_numbers<[1], [0], [0], [1], [0, 0, 1, 1], [], []>} : vector<32x8xbf16>, vector<8x8xbf16>, vector<32x8xf32> -> vector<32x8xf32>
    %67 = arith.addf %60, %66 : vector<32x8xf32>
    %c0_57 = arith.constant 0 : index
    %c8_58 = arith.constant 8 : index
    %c0_59 = arith.constant 0 : index
    %68 = vector.load %arg11[%c0_57, %c8_58, %c0_59] : memref<2x25x8xf32, #tpu.memory_space<vmem>>, vector<2x16x8xf32>
    %69 = arith.truncf %68 : vector<2x16x8xf32> to vector<2x16x8xbf16>
    %70 = vector.shape_cast %69 : vector<2x16x8xbf16> to vector<32x8xbf16>
    %c1_60 = arith.constant 1 : index
    %c0_61 = arith.constant 0 : index
    %c0_62 = arith.constant 0 : index
    %71 = vector.load %arg3[%c1_60, %c0_61, %c0_62] : memref<3x8x8xbf16, #tpu.memory_space<vmem>>, vector<1x8x8xbf16>
    %72 = vector.shape_cast %71 : vector<1x8x8xbf16> to vector<8x8xbf16>
    %cst_63 = arith.constant dense<0.000000e+00> : vector<32x8xf32>
    %73 = tpu.matmul %70, %72, %cst_63 {dimension_numbers = #tpu.dot_dimension_numbers<[1], [0], [0], [1], [0, 0, 1, 1], [], []>} : vector<32x8xbf16>, vector<8x8xbf16>, vector<32x8xf32> -> vector<32x8xf32>
    %74 = arith.addf %67, %73 : vector<32x8xf32>
    %c0_64 = arith.constant 0 : index
    %c9_65 = arith.constant 9 : index
    %c0_66 = arith.constant 0 : index
    %75 = vector.load %arg11[%c0_64, %c9_65, %c0_66] : memref<2x25x8xf32, #tpu.memory_space<vmem>>, vector<2x16x8xf32>
    %76 = arith.truncf %75 : vector<2x16x8xf32> to vector<2x16x8xbf16>
    %77 = vector.shape_cast %76 : vector<2x16x8xbf16> to vector<32x8xbf16>
    %c2_67 = arith.constant 2 : index
    %c0_68 = arith.constant 0 : index
    %c0_69 = arith.constant 0 : index
    %78 = vector.load %arg3[%c2_67, %c0_68, %c0_69] : memref<3x8x8xbf16, #tpu.memory_space<vmem>>, vector<1x8x8xbf16>
    %79 = vector.shape_cast %78 : vector<1x8x8xbf16> to vector<8x8xbf16>
    %cst_70 = arith.constant dense<0.000000e+00> : vector<32x8xf32>
    %80 = tpu.matmul %77, %79, %cst_70 {dimension_numbers = #tpu.dot_dimension_numbers<[1], [0], [0], [1], [0, 0, 1, 1], [], []>} : vector<32x8xbf16>, vector<8x8xbf16>, vector<32x8xf32> -> vector<32x8xf32>
    %81 = arith.addf %74, %80 : vector<32x8xf32>
    %82 = vector.shape_cast %81 : vector<32x8xf32> to vector<2x16x8xf32>
    %cst_71 = arith.constant dense<0.000000e+00> : vector<2x8xf32>
    %83 = vector.multi_reduction <add>, %82, %cst_71 [1] : vector<2x16x8xf32> to vector<2x8xf32>
    %84 = vector.shape_cast %83 : vector<2x8xf32> to vector<2x1x8xf32>
    %cst_72 = arith.constant 1.600000e+01 : f32
    %85 = vector.broadcast %cst_72 : f32 to vector<2x1x8xf32>
    %86 = arith.divf %84, %85 : vector<2x1x8xf32>
    %87 = vector.broadcast %86 : vector<2x1x8xf32> to vector<2x16x8xf32>
    %88 = arith.subf %82, %87 : vector<2x16x8xf32>
    %89 = arith.mulf %88, %88 : vector<2x16x8xf32>
    %cst_73 = arith.constant dense<0.000000e+00> : vector<2x8xf32>
    %90 = vector.multi_reduction <add>, %89, %cst_73 [1] : vector<2x16x8xf32> to vector<2x8xf32>
    %91 = vector.shape_cast %90 : vector<2x8xf32> to vector<2x1x8xf32>
    %cst_74 = arith.constant 1.600000e+01 : f32
    %92 = vector.broadcast %cst_74 : f32 to vector<2x1x8xf32>
    %93 = arith.divf %91, %92 : vector<2x1x8xf32>
    %cst_75 = arith.constant 9.99999974E-6 : f32
    %94 = vector.broadcast %cst_75 : f32 to vector<2x1x8xf32>
    %95 = arith.addf %93, %94 : vector<2x1x8xf32>
    %96 = math.rsqrt %95 : vector<2x1x8xf32>
    %97 = vector.broadcast %96 : vector<2x1x8xf32> to vector<2x16x8xf32>
    %98 = arith.mulf %88, %97 : vector<2x16x8xf32>
    %c0_76 = arith.constant 0 : index
    %c0_77 = arith.constant 0 : index
    %99 = vector.load %arg7[%c0_76, %c0_77] : memref<16x1xf32, #tpu.memory_space<vmem>>, vector<16x1xf32>
    %100 = vector.shape_cast %99 : vector<16x1xf32> to vector<1x16x1xf32>
    %101 = vector.broadcast %100 : vector<1x16x1xf32> to vector<2x16x8xf32>
    %102 = arith.mulf %98, %101 : vector<2x16x8xf32>
    %c0_78 = arith.constant 0 : index
    %c0_79 = arith.constant 0 : index
    %103 = vector.load %arg8[%c0_78, %c0_79] : memref<16x1xf32, #tpu.memory_space<vmem>>, vector<16x1xf32>
    %104 = vector.shape_cast %103 : vector<16x1xf32> to vector<1x16x1xf32>
    %105 = vector.broadcast %104 : vector<1x16x1xf32> to vector<2x16x8xf32>
    %106 = arith.addf %102, %105 : vector<2x16x8xf32>
    %107 = arith.truncf %0 : vector<2x16x4xf32> to vector<2x16x4xbf16>
    %108 = vector.shape_cast %107 : vector<2x16x4xbf16> to vector<32x4xbf16>
    %c0_80 = arith.constant 0 : index
    %c0_81 = arith.constant 0 : index
    %109 = vector.load %arg4[%c0_80, %c0_81] : memref<4x8xbf16, #tpu.memory_space<vmem>>, vector<4x8xbf16>
    %cst_82 = arith.constant dense<0.000000e+00> : vector<32x8xf32>
    %110 = tpu.matmul %108, %109, %cst_82 {dimension_numbers = #tpu.dot_dimension_numbers<[1], [0], [0], [1], [0, 0, 1, 1], [], []>} : vector<32x4xbf16>, vector<4x8xbf16>, vector<32x8xf32> -> vector<32x8xf32>
    %111 = vector.shape_cast %110 : vector<32x8xf32> to vector<2x16x8xf32>
    %112 = arith.addf %111, %106 : vector<2x16x8xf32>
    %cst_83 = arith.constant 0.000000e+00 : f32
    %113 = vector.broadcast %cst_83 : f32 to vector<2x16x8xf32>
    %114 = arith.maximumf %112, %113 : vector<2x16x8xf32>
    %c0_84 = arith.constant 0 : index
    %c0_85 = arith.constant 0 : index
    %c0_86 = arith.constant 0 : index
    %115 = vector.load %arg9[%c0_84, %c0_85, %c0_86] : memref<2x16x8xf32, #tpu.memory_space<vmem>>, vector<2x16x8xf32>
    tpu.vector_store %arg9[%c0_84, %c0_85, %c0_86], %114 {strides = array<i32>} : memref<2x16x8xf32, #tpu.memory_space<vmem>>, vector<2x16x8xf32>,
    return
  }
  func.func @transform_0(%arg0: i32) -> (i32, i32, i32) {
    %c0_i32 = arith.constant 0 : i32
    %c0_i32_0 = arith.constant 0 : i32
    %c0_i32_1 = arith.constant 0 : i32
    return %arg0, %c0_i32, %c0_i32_0 : i32, i32, i32
  }
  func.func @transform_1(%arg0: i32) -> (i32, i32, i32) {
    %c0_i32 = arith.constant 0 : i32
    %c0_i32_0 = arith.constant 0 : i32
    %c0_i32_1 = arith.constant 0 : i32
    %c0_i32_2 = arith.constant 0 : i32
    return %c0_i32, %c0_i32_0, %c0_i32_1 : i32, i32, i32
  }
  func.func @transform_2(%arg0: i32) -> (i32, i32, i32) {
    %c0_i32 = arith.constant 0 : i32
    %c0_i32_0 = arith.constant 0 : i32
    %c0_i32_1 = arith.constant 0 : i32
    %c0_i32_2 = arith.constant 0 : i32
    return %c0_i32, %c0_i32_0, %c0_i32_1 : i32, i32, i32
  }
  func.func @transform_3(%arg0: i32) -> (i32, i32) {
    %c0_i32 = arith.constant 0 : i32
    %c0_i32_0 = arith.constant 0 : i32
    %c0_i32_1 = arith.constant 0 : i32
    return %c0_i32, %c0_i32_0 : i32, i32
  }
  func.func @transform_4(%arg0: i32) -> (i32, i32) {
    %c0_i32 = arith.constant 0 : i32
    %c0_i32_0 = arith.constant 0 : i32
    %c0_i32_1 = arith.constant 0 : i32
    return %c0_i32, %c0_i32_0 : i32, i32
  }
  func.func @transform_5(%arg0: i32) -> (i32, i32) {
    %c0_i32 = arith.constant 0 : i32
    %c0_i32_0 = arith.constant 0 : i32
    %c0_i32_1 = arith.constant 0 : i32
    return %c0_i32, %c0_i32_0 : i32, i32
  }
  func.func @transform_6(%arg0: i32) -> (i32, i32) {
    %c0_i32 = arith.constant 0 : i32
    %c0_i32_0 = arith.constant 0 : i32
    %c0_i32_1 = arith.constant 0 : i32
    return %c0_i32, %c0_i32_0 : i32, i32
  }
  func.func @transform_7(%arg0: i32) -> (i32, i32) {
    %c0_i32 = arith.constant 0 : i32
    %c0_i32_0 = arith.constant 0 : i32
    %c0_i32_1 = arith.constant 0 : i32
    return %c0_i32, %c0_i32_0 : i32, i32
  }
  func.func @transform_8(%arg0: i32) -> (i32, i32, i32) {
    %c0_i32 = arith.constant 0 : i32
    %c0_i32_0 = arith.constant 0 : i32
    %c0_i32_1 = arith.constant 0 : i32
    return %arg0, %c0_i32, %c0_i32_0 : i32, i32, i32
  }
}

</mosaic_0001>

<bundles_post_ra>
// kernel: resblock_forward.1
= control target key start
LH: loop header
LB: loop body
LE: loop exit
PB: predicated region body
PF: predicated region fallthrough
CT: control target
= control target key end

     0   :  { %vm79_vm0 = vcmask 1041408   ;;  %vm39_vm1 = vcmask 31744   ;;  %vm34_vm2 = vcmask 24576   ;;  %v667_v8 = vmov 0.0   ;;  %s900_s1 = inlined_call_operand.vmem [shape: bf16[3,4,8], index: 1, kind: input, shape index: {}]   ;;  %s901_s0 = inlined_call_operand.vmem [shape: f32[2,16,4], index: 0, kind: input, shape index: {}]   ;;  %s902_s4 = inlined_call_operand.vmem [shape: f32[16,1], index: 4, kind: input, shape index: {}]   ;;  %s903_s5 = inlined_call_operand.vmem [shape: f32[16,1], index: 5, kind: input, shape index: {}]   ;;  %s904_s7 = inlined_call_operand.vmem [shape: f32[16,1], index: 7, kind: input, shape index: {}]   ;;  %s905_s2 = inlined_call_operand.vmem [shape: bf16[3,8,8], index: 2, kind: input, shape index: {}]   ;;  %s906_s3 = inlined_call_operand.vmem [shape: bf16[4,8], index: 3, kind: input, shape index: {}]   ;;  %s907_s6 = inlined_call_operand.vmem [shape: f32[16,1], index: 6, kind: input, shape index: {}]   ;;  %s908_s8 = inlined_call_operand.vmem [shape: f32[2,16,8], index: 8, kind: output, shape index: {}]  }
   0x1   :  { %v632_v0 = vld [vmem:[%s900_s1 + $0x2] sm:$0x3]  ;;  %v52_v1 = vld [vmem:[%s900_s1] sm:$0x3]  ;;  %v637_v2 = vld [vmem:[%s900_s1 + $0x4] sm:$0x3] }
   0x2   :  { %v81_v3 = vsel %vm79_vm0, %v632_v0, 0  ;;  %v119_v4 = vsel %vm79_vm0, %v52_v1, 0  ;;  %v167_v5 = vsel %vm79_vm0, %v637_v2, 0  ;;  %v730_v6 = vld [vmem:[%s901_s0] sm:$0xff]  ;;  %v735_v7 = vld [vmem:[%s901_s0 + $0x8] sm:$0xff]  ;;  %v754_v11 = vld [vmem:[%s901_s0 + $0x10] sm:$0xff] }
   0x3   :  { %90 = vmatpush.bf16.msra.mxu0 %v81_v3  ;;  %128 = vmatpush.bf16.msra.mxu1 %v119_v4  ;;  %40 = vst.msk [vmem:[#allocation2 + $0x8] sm:$0xff] %vm39_vm1, %v730_v6  ;;  %v274_v9 = vld [vmem:[%s902_s4] sm:$0xff]  ;;  %v668_v12 = vmov 0   ;;  %v761_v13 = vld [vmem:[%s901_s0 + $0x18] sm:$0xff]  ;;  %v275_v23 = vld [vmem:[%s902_s4 + $0x8] sm:$0xff]  ;;  %v669_v62 = vmov 16.0  }
   0x4   :  { %176 = vmatpush.bf16.msra.mxu2 %v167_v5  ;;  %41 = vst.msk [vmem:[#allocation2 + $0x10] sm:$0xff] %vm39_vm1, %v735_v7  ;;  %650 = vmatpush.bf16.msra.mxu3 %v81_v3  ;;  %v290_v10 = vld [vmem:[%s903_s5] sm:$0xff]  ;;  %v291_v24 = vld [vmem:[%s903_s5 + $0x8] sm:$0xff]  ;;  %657 = vrcp.f32 %v669_v62  ;;  %vm192_vm3 = vcmask 64512   ;;  %vm310_vm5 = vcmask 57344   ;;  %vm354_vm6 = vcmask 1043456  }
   0x5   :  { %35 = vst.msk [vmem:[#allocation2 + $0x7] sm:$0x1] %vm34_vm2, %v667_v8  ;;  %654 = vset.pattern.permute.xlu0 %v668_v12  ;;  %655 = vset.pattern.permute.xlu1 %v668_v12  ;;  %v557_v42 = vld [vmem:[%s904_s7] sm:$0xff]  ;;  %v558_v46 = vld [vmem:[%s904_s7 + $0x8] sm:$0xff] }
   0x6   :  { %36 = vst.msk [vmem:[#allocation2 + $0x27] sm:$0x1] %vm34_vm2, %v667_v8  ;;  %278 = vperm.xlu0 %654, %v274_v9   ;;  %294 = vperm.xlu1 %655, %v290_v10  }
   0x7   :  { %37 = vst.msk [vmem:[#allocation2 + $0x18] sm:$0x1] %vm34_vm2, %v667_v8  ;;  %656 = vset.pattern.permute.xlu2 %v668_v12 }
   0x8   :  { %38 = vst.msk [vmem:[#allocation2 + $0x38] sm:$0x1] %vm34_vm2, %v667_v8 }
   0x9   :  { %42 = vst.msk [vmem:[#allocation2 + $0x28] sm:$0xff] %vm39_vm1, %v754_v11 }
   0xa   :  { %v53_v14 = vld [vmem:[#allocation2 + $0x8] sm:$0xff]  ;;  %43 = vst.msk [vmem:[#allocation2 + $0x30] sm:$0xff] %vm39_vm1, %v761_v13  ;;  %v658_v2 = vpop.eup %657 }
   0xb   :  { %v54_v15 = vld [vmem:[#allocation2 + $0x10] sm:$0xff]  ;;  %v57_v16 = vpack.c.bf16 %v53_v14, %v53_v14  ;;  %v212_v9 = vmul.f32 16.0, %v658_v2  ;;  %vm216_vm4 = vweird.f32 %v658_v2  ;;  %311 = vst.msk [vmem:[#allocation3 + $0x7] sm:$0x1] %vm310_vm5, %v667_v8 }
   0xc   :  { %v45_v17 = vld [vmem:[#allocation2 + $0xf] sm:$0xff]  ;;  %v58_v19 = vpack.c.bf16 %v54_v15, %v54_v15  ;;  %v44_v20 = vld [vmem:[#allocation2 + $0x7] sm:$0xff]  ;;  %312 = vst.msk [vmem:[#allocation3 + $0x27] sm:$0x1] %vm310_vm5, %v667_v8 }
   0xd   :  { %v140_v18 = vld [vmem:[#allocation2 + $0x9] sm:$0xff]  ;;  %v49_v21 = vpack.c.bf16 %v45_v17, %v45_v17  ;;  %v67_v25 = vunpack.c.l.b16 %v57_v16  ;;  %v48_v26 = vpack.c.bf16 %v44_v20, %v44_v20  ;;  %v213_v17 = vsub.f32 1.0, %v212_v9  ;;  %313 = vst.msk [vmem:[#allocation3 + $0x18] sm:$0x1] %vm310_vm5, %v667_v8 }
   0xe   :  { %v144_v22 = vpack.c.bf16 %v140_v18, %v140_v18  ;;  %v68_v27 = vunpack.c.l.b16 %v58_v19  ;;  %v141_v29 = vld [vmem:[#allocation2 + $0x11] sm:$0xff]  ;;  %283 = vperm.xlu0 %654, %v275_v23   ;;  %299 = vperm.xlu1 %655, %v291_v24   ;;  %314 = vst.msk [vmem:[#allocation3 + $0x38] sm:$0x1] %vm310_vm5, %v667_v8 }
   0xf   :  { %v107_v28 = vunpack.c.l.b16 %v49_v21  ;;  %v106_v30 = vunpack.c.l.b16 %v48_v26  ;;  %v145_v31 = vpack.c.bf16 %v141_v29, %v141_v29  ;;  %v214_v21 = vmul.f32 %v658_v2, %v213_v17 }
  0x10   :  { %v154_v32 = vunpack.c.l.b16 %v144_v22  ;;  %v71_v33 = vpack.c.b16 %v68_v27, %v67_v25  ;;  %v55_v34 = vld [vmem:[#allocation2 + $0x28] sm:$0xff] }
  0x11   :  { %v110_v35 = vpack.c.b16 %v107_v28, %v106_v30  ;;  %v155_v36 = vunpack.c.l.b16 %v145_v31  ;;  %v56_v37 = vld [vmem:[#allocation2 + $0x30] sm:$0xff]  ;;  %v59_v38 = vpack.c.bf16 %v55_v34, %v55_v34  ;;  %v46_v44 = vld [vmem:[#allocation2 + $0x27] sm:$0xff]  ;;  %v215_v25 = vadd.f32 %v658_v2, %v214_v21 }
  0x12   :  { %633 = vmatmul.msk.bf16.vlgmr.msra.gmra.mxu0 %vm39_vm1, %v71_v33  ;;  %v60_v39 = vpack.c.bf16 %v56_v37, %v56_v37  ;;  %v47_v45 = vld [vmem:[#allocation2 + $0x2f] sm:$0xff]  ;;  %v50_v50 = vpack.c.bf16 %v46_v44, %v46_v44 }
  0x13   :  { %635 = vmatmul.msk.bf16.vlgmr.msra.gmra.mxu1 %vm39_vm1, %v110_v35  ;;  %v158_v40 = vpack.c.b16 %v155_v36, %v154_v32  ;;  %v69_v41 = vunpack.c.l.b16 %v59_v38  ;;  %v142_v48 = vld [vmem:[#allocation2 + $0x29] sm:$0xff]  ;;  %v143_v49 = vld [vmem:[#allocation2 + $0x31] sm:$0xff]  ;;  %v51_v51 = vpack.c.bf16 %v47_v45, %v47_v45  ;;  %v789_v31 = vsel %vm216_vm4, %v658_v2, %v215_v25 }
  0x14   :  { %v70_v43 = vunpack.c.l.b16 %v60_v39  ;;  %v146_v52 = vpack.c.bf16 %v142_v48, %v142_v48  ;;  %v147_v53 = vpack.c.bf16 %v143_v49, %v143_v49  ;;  %v108_v54 = vunpack.c.l.b16 %v50_v50 }
  0x15   :  { %638 = vmatmul.msk.bf16.vlgmr.msra.gmra.mxu2 %vm39_vm1, %v158_v40  ;;  %v109_v55 = vunpack.c.l.b16 %v51_v51 }
  0x16   :  { %v72_v47 = vpack.c.b16 %v70_v43, %v69_v41  ;;  %561 = vperm.xlu0 %654, %v557_v42   ;;  %566 = vperm.xlu1 %655, %v558_v46   ;;  %v156_v56 = vunpack.c.l.b16 %v146_v52  ;;  %v157_v57 = vunpack.c.l.b16 %v147_v53 }
  0x17   :  { %v111_v58 = vpack.c.b16 %v109_v55, %v108_v54 }
  0x18   :  { %634 = vmatmul.msk.bf16.vlgmr.msra.gmra.mxu3 %vm39_vm1, %v72_v47  ;;  %v159_v59 = vpack.c.b16 %v157_v57, %v156_v56 }
  0x23   :  { %636 = vmatmul.msk.bf16.gmra.mxu1 %vm39_vm1, %v111_v58 }
  0x25   :  { %639 = vmatmul.msk.bf16.gmra.mxu2 %vm39_vm1, %v159_v59 }
  0x8f   :  { %v92_v61 = vpop.f32.mrf.mxu0 }
  0x90   :  { %v130_v60 = vpop.f32.mrf.mxu1 }
  0x91   :  { %v131_v1 = vadd.f32 %v130_v60, %v92_v61 }
  0x97   :  { %v94_v3 = vpop.f32.mrf.mxu0 }
  0x98   :  { %v178_v63 = vpop.f32.mrf.mxu2  ;;  %v132_v0 = vpop.f32.mrf.mxu1 }
  0x99   :  { %v188_v4 = vadd.f32 %v178_v63, %v131_v1  ;;  %v133_v5 = vadd.f32 %v132_v0, %v94_v3 }
  0x9b   :  { %v193_v15 = vsel %vm192_vm3, %v188_v4, 0.0  ;;  %v97_v18 = vpop.f32.mrf.mxu3 }
  0xa0   :  { %v180_v10 = vpop.f32.mrf.mxu2  ;;  %v135_v14 = vpop.f32.mrf.mxu1 }
  0xa1   :  { %v189_v12 = vadd.f32 %v180_v10, %v133_v5  ;;  %v136_v26 = vadd.f32 %v135_v14, %v97_v18  ;;  %v645_v14 = vld [vmem:[%s905_s2 + $0x8] sm:$0xf]  ;;  %v327_v18 = vld [vmem:[%s905_s2] sm:$0xf] }
  0xa3   :  { %v194_v16 = vsel %vm192_vm3, %v189_v12, 0.0  ;;  %v99_v30 = vpop.f32.mrf.mxu3 }
  0xa4   :  { %v195_v19 = vadd.f32 %v194_v16, %v193_v15  ;;  %v640_v15 = vld [vmem:[%s905_s2 + $0x4] sm:$0xf]  ;;  %v442_v16 = vsel %vm354_vm6, %v645_v14, 0 }
  0xa5   :  { %v356_v17 = vsel %vm354_vm6, %v640_v15, 0  ;;  %451 = vmatpush.bf16.msrb.mxu1 %v442_v16 }
  0xa6   :  { %v196_v20 = vrot.slane %v195_v19, 4  ;;  %365 = vmatpush.bf16.msrb.mxu3 %v356_v17 }
  0xa8   :  { %v197_v22 = vadd.f32 %v196_v20, %v195_v19  ;;  %v183_v23 = vpop.f32.mrf.mxu2  ;;  %v137_v28 = vpop.f32.mrf.mxu1  ;;  %v394_v20 = vsel %vm354_vm6, %v327_v18, 0 }
  0xa9   :  { %v190_v32 = vadd.f32 %v183_v23, %v136_v26  ;;  %v138_v33 = vadd.f32 %v137_v28, %v99_v30  ;;  %403 = vmatpush.bf16.msrb.mxu0 %v394_v20  ;;  %v829_v23 = vpop.permute.xlu0 %278 }
  0xaa   :  { %v198_v24 = vrot.slane %v197_v22, 2 }
  0xab   :  { %v202_v38 = vsel %vm192_vm3, %v190_v32, 0.0 }
  0xac   :  { %v199_v27 = vadd.f32 %v198_v24, %v197_v22 }
  0xae   :  { %v200_v29 = vrot.slane %v199_v27, 1 }
  0xb0   :  { %v201_v34 = vadd.f32 %v200_v29, %v199_v27  ;;  %v185_v35 = vpop.f32.mrf.mxu2  ;;  %v831_v27 = vpop.permute.xlu1 %294 }
  0xb1   :  { %v191_v36 = vadd.f32 %v185_v35, %v138_v33 }
  0xb2   :  { %v218_v37 = vmul.f32 %v789_v31, %v201_v34 }
  0xb3   :  { %v203_v39 = vsel %vm192_vm3, %v191_v36, 0.0 }
  0xb4   :  { %v794_v40 = vsub.f32 %v189_v12, %v218_v37  ;;  %v204_v41 = vadd.f32 %v203_v39, %v202_v38  ;;  %v796_v42 = vsub.f32 %v188_v4, %v218_v37 }
  0xb6   :  { %v225_v43 = vmul.f32 %v794_v40, %v794_v40  ;;  %v205_v44 = vrot.slane %v204_v41, 4  ;;  %v224_v45 = vmul.f32 %v796_v42, %v796_v42 }
  0xb8   :  { %v229_v46 = vsel %vm192_vm3, %v225_v43, 0.0  ;;  %v206_v47 = vadd.f32 %v205_v44, %v204_v41  ;;  %v228_v48 = vsel %vm192_vm3, %v224_v45, 0.0  ;;  %v300_v39 = vpop.permute.xlu1 %299 }
  0xb9   :  { %v230_v49 = vadd.f32 %v229_v46, %v228_v48 }
  0xba   :  { %v207_v50 = vrot.slane %v206_v47, 2 }
  0xbb   :  { %v231_v51 = vrot.slane %v230_v49, 4 }
  0xbc   :  { %v208_v52 = vadd.f32 %v207_v50, %v206_v47  ;;  %v574_v50 = vpack.c.bf16 %v735_v7, %v735_v7  ;;  %v575_v7 = vpack.c.bf16 %v754_v11, %v754_v11  ;;  %v576_v11 = vpack.c.bf16 %v761_v13, %v761_v13 }
  0xbd   :  { %v232_v53 = vadd.f32 %v231_v51, %v230_v49  ;;  %v541_v51 = vld [vmem:[%s907_s6] sm:$0xff] }
  0xbe   :  { %v209_v54 = vrot.slane %v208_v52, 1  ;;  %545 = vperm.xlu2 %656, %v541_v51  }
  0xbf   :  { %v233_v55 = vrot.slane %v232_v53, 2 }
  0xc0   :  { %v210_v56 = vadd.f32 %v209_v54, %v208_v52 }
  0xc1   :  { %v234_v57 = vadd.f32 %v233_v55, %v232_v53  ;;  %v583_v55 = vunpack.c.l.b16 %v574_v50 }
  0xc2   :  { %v219_v58 = vmul.f32 %v789_v31, %v210_v56 }
  0xc3   :  { %v235_v59 = vrot.slane %v234_v57, 1 }
  0xc4   :  { %v805_v60 = vsub.f32 %v191_v36, %v219_v58  ;;  %v807_v61 = vsub.f32 %v190_v32, %v219_v58  ;;  %v284_v36 = vpop.permute.xlu0 %283 }
  0xc5   :  { %v236_v62 = vadd.f32 %v235_v59, %v234_v57 }
  0xc6   :  { %v227_v63 = vmul.f32 %v805_v60, %v805_v60  ;;  %v226_v0 = vmul.f32 %v807_v61, %v807_v61 }
  0xc7   :  { %v246_v1 = vmul.f32 %v236_v62, %v789_v31  ;;  %v542_v62 = vld [vmem:[%s907_s6 + $0x8] sm:$0xff] }
  0xc8   :  { %v238_v2 = vsel %vm192_vm3, %v227_v63, 0.0  ;;  %v237_v3 = vsel %vm192_vm3, %v226_v0, 0.0  ;;  %550 = vperm.xlu2 %656, %v542_v62  }
  0xc9   :  { %v239_v4 = vadd.f32 %v238_v2, %v237_v3  ;;  %v248_v5 = vadd.f32 1e-05, %v246_v1 }
  0xcb   :  { %v240_v9 = vrot.slane %v239_v4, 4  ;;  %659 = vrsqrt.f32 %v248_v5  ;;  %vm256_vm8 = vweird.f32 %v248_v5 }
  0xcd   :  { %v241_v10 = vadd.f32 %v240_v9, %v239_v4 }
  0xcf   :  { %v242_v12 = vrot.slane %v241_v10, 2 }
  0xd1   :  { %v660_v8 = vpop.eup %659  ;;  %v243_v19 = vadd.f32 %v242_v12, %v241_v10 }
  0xd2   :  { %v251_v21 = vmul.f32 %v660_v8, %v248_v5  ;;  %vm257_vm7 = vweird.f32 %v660_v8 }
  0xd3   :  { %v244_v22 = vrot.slane %v243_v19, 1  ;;  %vm258_vm9 = vmor %vm256_vm8, %vm257_vm7 }
  0xd4   :  { %v252_v24 = vmul.f32 %v660_v8, %v251_v21 }
  0xd5   :  { %v245_v25 = vadd.f32 %v244_v22, %v243_v19 }
  0xd6   :  { %v253_v26 = vmul.f32 0.5, %v252_v24 }
  0xd7   :  { %v247_v28 = vmul.f32 %v245_v25, %v789_v31 }
  0xd8   :  { %v254_v29 = vsub.f32 1.5, %v253_v26 }
  0xd9   :  { %v249_v30 = vadd.f32 1e-05, %v247_v28 }
  0xda   :  { %v255_v32 = vmul.f32 %v660_v8, %v254_v29  ;;  %v585_v29 = vunpack.c.l.b16 %v576_v11 }
  0xdb   :  { %661 = vrsqrt.f32 %v249_v30  ;;  %vm266_vm11 = vweird.f32 %v249_v30 }
  0xdc   :  { %v259_v33 = vsel %vm258_vm9, %v660_v8, %v255_v32 }
  0xdd   :  { %v270_v34 = vmul.f32 %v259_v33, %v796_v42  ;;  %v271_v35 = vmul.f32 %v259_v33, %v794_v40  ;;  %v577_v40 = vld [vmem:[%s906_s3] sm:$0x3]  ;;  %v573_v42 = vpack.c.bf16 %v730_v6, %v730_v6 }
  0xde   :  { %v595_v52 = vsel %vm79_vm0, %v577_v40, 0 }
  0xdf   :  { %v286_v37 = vmul.f32 %v829_v23, %v270_v34  ;;  %v287_v38 = vmul.f32 %v284_v36, %v271_v35  ;;  %604 = vmatpush.bf16.msrb.mxu2 %v595_v52  ;;  %v582_v54 = vunpack.c.l.b16 %v573_v42 }
  0xe1   :  { %v662_v41 = vpop.eup %661  ;;  %v302_v43 = vadd.f32 %v831_v27, %v286_v37  ;;  %v303_v44 = vadd.f32 %v300_v39, %v287_v38  ;;  %v586_v57 = vpack.c.b16 %v583_v55, %v582_v54 }
  0xe2   :  { %v261_v45 = vmul.f32 %v662_v41, %v249_v30  ;;  %vm267_vm10 = vweird.f32 %v662_v41 }
  0xe3   :  { %v306_v46 = vmax.f32 %v302_v43, 0.0  ;;  %v307_v47 = vmax.f32 %v303_v44, 0.0  ;;  %vm268_vm12 = vmor %vm266_vm11, %vm267_vm10  ;;  %648 = vmatmul.msk.bf16.vlgmr.msrb.gmra.mxu2 %vm39_vm1, %v586_v57 }
  0xe4   :  { %v262_v48 = vmul.f32 %v662_v41, %v261_v45 }
  0xe5   :  { %315 = vst.msk [vmem:[#allocation3 + $0x8] sm:$0xff] %vm192_vm3, %v306_v46 }
  0xe6   :  { %v263_v49 = vmul.f32 0.5, %v262_v48  ;;  %316 = vst.msk [vmem:[#allocation3 + $0x10] sm:$0xff] %vm192_vm3, %v307_v47 }
  0xe8   :  { %v264_v53 = vsub.f32 1.5, %v263_v49 }
  0xea   :  { %v265_v56 = vmul.f32 %v662_v41, %v264_v53 }
  0xec   :  { %v269_v6 = vsel %vm268_vm12, %v662_v41, %v265_v56  ;;  %v328_v58 = vld [vmem:[#allocation3 + $0x8] sm:$0xff] }
  0xed   :  { %v319_v59 = vld [vmem:[#allocation3 + $0x7] sm:$0xff]  ;;  %v272_v63 = vmul.f32 %v269_v6, %v807_v61  ;;  %v273_v0 = vmul.f32 %v269_v6, %v805_v60  ;;  %v329_v1 = vld [vmem:[#allocation3 + $0x10] sm:$0xff]  ;;  %v332_v2 = vpack.c.bf16 %v328_v58, %v328_v58 }
  0xee   :  { %v320_v3 = vld [vmem:[#allocation3 + $0xf] sm:$0xff]  ;;  %v323_v4 = vpack.c.bf16 %v319_v59, %v319_v59  ;;  %v333_v9 = vpack.c.bf16 %v329_v1, %v329_v1 }
  0xef   :  { %v415_v5 = vld [vmem:[#allocation3 + $0x9] sm:$0xff]  ;;  %v324_v10 = vpack.c.bf16 %v320_v3, %v320_v3  ;;  %v416_v12 = vld [vmem:[#allocation3 + $0x11] sm:$0xff]  ;;  %v288_v15 = vmul.f32 %v829_v23, %v272_v63  ;;  %v289_v16 = vmul.f32 %v284_v36, %v273_v0  ;;  %v342_v17 = vunpack.c.l.b16 %v332_v2 }
  0xf0   :  { %v419_v14 = vpack.c.bf16 %v415_v5, %v415_v5  ;;  %v381_v18 = vunpack.c.l.b16 %v323_v4  ;;  %v343_v61 = vunpack.c.l.b16 %v333_v9  ;;  %v420_v8 = vpack.c.bf16 %v416_v12, %v416_v12 }
  0xf1   :  { %v382_v60 = vunpack.c.l.b16 %v324_v10  ;;  %v304_v20 = vadd.f32 %v831_v27, %v288_v15  ;;  %v305_v21 = vadd.f32 %v300_v39, %v289_v16  ;;  %v584_v23 = vunpack.c.l.b16 %v575_v7 }
  0xf2   :  { %v429_v19 = vunpack.c.l.b16 %v419_v14  ;;  %v346_v22 = vpack.c.b16 %v343_v61, %v342_v17  ;;  %v430_v25 = vunpack.c.l.b16 %v420_v8 }
  0xf3   :  { %v385_v24 = vpack.c.b16 %v382_v60, %v381_v18  ;;  %v308_v26 = vmax.f32 %v304_v20, 0.0  ;;  %v309_v28 = vmax.f32 %v305_v21, 0.0  ;;  %v587_v27 = vpack.c.b16 %v585_v29, %v584_v23 }
  0xf4   :  { %641 = vmatmul.msk.bf16.vlgmr.msrb.gmra.mxu3 %vm192_vm3, %v346_v22  ;;  %v433_v13 = vpack.c.b16 %v430_v25, %v429_v19 }
  0xf5   :  { %643 = vmatmul.msk.bf16.vlgmr.msrb.gmra.mxu0 %vm192_vm3, %v385_v24  ;;  %317 = vst.msk [vmem:[#allocation3 + $0x28] sm:$0xff] %vm192_vm3, %v308_v26  ;;  %649 = vmatmul.msk.bf16.gmra.mxu2 %vm39_vm1, %v587_v27 }
  0xf6   :  { %318 = vst.msk [vmem:[#allocation3 + $0x30] sm:$0xff] %vm192_vm3, %v309_v28  ;;  %646 = vmatmul.msk.bf16.vlgmr.msrb.gmra.mxu1 %vm192_vm3, %v433_v13 }
  0xfc   :  { %v330_v30 = vld [vmem:[#allocation3 + $0x28] sm:$0xff] }
  0xfd   :  { %v321_v32 = vld [vmem:[#allocation3 + $0x27] sm:$0xff]  ;;  %v331_v33 = vld [vmem:[#allocation3 + $0x30] sm:$0xff]  ;;  %v334_v34 = vpack.c.bf16 %v330_v30, %v330_v30 }
  0xfe   :  { %v322_v35 = vld [vmem:[#allocation3 + $0x2f] sm:$0xff]  ;;  %v325_v36 = vpack.c.bf16 %v321_v32, %v321_v32  ;;  %v335_v38 = vpack.c.bf16 %v331_v33, %v331_v33 }
  0xff   :  { %v417_v37 = vld [vmem:[#allocation3 + $0x29] sm:$0xff]  ;;  %v326_v39 = vpack.c.bf16 %v322_v35, %v322_v35  ;;  %v418_v41 = vld [vmem:[#allocation3 + $0x31] sm:$0xff]  ;;  %v344_v44 = vunpack.c.l.b16 %v334_v34 }
 0x100   :  { %v421_v43 = vpack.c.bf16 %v417_v37, %v417_v37  ;;  %v383_v45 = vunpack.c.l.b16 %v325_v36  ;;  %v422_v46 = vpack.c.bf16 %v418_v41, %v418_v41  ;;  %v345_v47 = vunpack.c.l.b16 %v335_v38 }
 0x101   :  { %v384_v48 = vunpack.c.l.b16 %v326_v39 }
 0x102   :  { %v431_v49 = vunpack.c.l.b16 %v421_v43  ;;  %v432_v40 = vunpack.c.l.b16 %v422_v46  ;;  %v347_v42 = vpack.c.b16 %v345_v47, %v344_v44 }
 0x103   :  { %v386_v50 = vpack.c.b16 %v384_v48, %v383_v45 }
 0x104   :  { %v434_v51 = vpack.c.b16 %v432_v40, %v431_v49  ;;  %642 = vmatmul.msk.bf16.gmra.mxu3 %vm192_vm3, %v347_v42 }
 0x105   :  { %644 = vmatmul.msk.bf16.gmra.mxu0 %vm192_vm3, %v386_v50 }
 0x106   :  { %647 = vmatmul.msk.bf16.gmra.mxu1 %vm192_vm3, %v434_v51 }
 0x172   :  { %v405_v52 = vpop.f32.mrf.mxu0 }
 0x173   :  { %v453_v53 = vpop.f32.mrf.mxu1 }
 0x177   :  { %v367_v54 = vpop.f32.mrf.mxu3 }
 0x178   :  { %v406_v56 = vadd.f32 %v405_v52, %v367_v54 }
 0x17a   :  { %v407_v55 = vpop.f32.mrf.mxu0  ;;  %v463_v58 = vadd.f32 %v453_v53, %v406_v56  ;;  %v546_v56 = vpop.permute.xlu2 %545 }
 0x17b   :  { %v455_v57 = vpop.f32.mrf.mxu1 }
 0x17c   :  { %v467_v62 = vsel %vm192_vm3, %v463_v58, 0.0 }
 0x17f   :  { %v369_v6 = vpop.f32.mrf.mxu3 }
 0x180   :  { %v408_v59 = vadd.f32 %v407_v55, %v369_v6 }
 0x182   :  { %v464_v7 = vadd.f32 %v455_v57, %v408_v59  ;;  %v410_v1 = vpop.f32.mrf.mxu0 }
 0x183   :  { %v458_v3 = vpop.f32.mrf.mxu1 }
 0x184   :  { %v468_v63 = vsel %vm192_vm3, %v464_v7, 0.0 }
 0x185   :  { %v469_v0 = vadd.f32 %v468_v63, %v467_v62 }
 0x187   :  { %v470_v2 = vrot.slane %v469_v0, 4  ;;  %v372_v4 = vpop.f32.mrf.mxu3 }
 0x188   :  { %v411_v10 = vadd.f32 %v410_v1, %v372_v4  ;;  %v551_v4 = vpop.permute.xlu2 %550 }
 0x189   :  { %v471_v5 = vadd.f32 %v470_v2, %v469_v0 }
 0x18a   :  { %v412_v11 = vpop.f32.mrf.mxu0  ;;  %v465_v16 = vadd.f32 %v458_v3, %v411_v10 }
 0x18b   :  { %v472_v9 = vrot.slane %v471_v5, 2  ;;  %v460_v61 = vpop.f32.mrf.mxu1 }
 0x18c   :  { %v476_v19 = vsel %vm192_vm3, %v465_v16, 0.0 }
 0x18d   :  { %v473_v12 = vadd.f32 %v472_v9, %v471_v5 }
 0x18f   :  { %v474_v14 = vrot.slane %v473_v12, 1  ;;  %v374_v15 = vpop.f32.mrf.mxu3 }
 0x190   :  { %v413_v17 = vadd.f32 %v412_v11, %v374_v15  ;;  %v562_v11 = vpop.permute.xlu0 %561  ;;  %v567_v15 = vpop.permute.xlu1 %566 }
 0x191   :  { %v475_v18 = vadd.f32 %v474_v14, %v473_v12 }
 0x192   :  { %v466_v60 = vadd.f32 %v460_v61, %v413_v17 }
 0x193   :  { %v485_v8 = vmul.f32 %v475_v18, %v789_v31 }
 0x194   :  { %v477_v20 = vsel %vm192_vm3, %v466_v60, 0.0 }
 0x195   :  { %v488_v21 = vsub.f32 %v464_v7, %v485_v8  ;;  %v478_v22 = vadd.f32 %v477_v20, %v476_v19  ;;  %v487_v24 = vsub.f32 %v463_v58, %v485_v8  ;;  %v606_v58 = vpop.f32.mrf.mxu2 }
 0x197   :  { %v492_v25 = vmul.f32 %v488_v21, %v488_v21  ;;  %v479_v26 = vrot.slane %v478_v22, 4  ;;  %v491_v28 = vmul.f32 %v487_v24, %v487_v24 }
 0x199   :  { %v496_v13 = vsel %vm192_vm3, %v492_v25, 0.0  ;;  %v480_v23 = vadd.f32 %v479_v26, %v478_v22  ;;  %v495_v29 = vsel %vm192_vm3, %v491_v28, 0.0 }
 0x19a   :  { %v497_v27 = vadd.f32 %v496_v13, %v495_v29 }
 0x19b   :  { %v481_v30 = vrot.slane %v480_v23, 2 }
 0x19c   :  { %v498_v32 = vrot.slane %v497_v27, 4 }
 0x19d   :  { %v482_v33 = vadd.f32 %v481_v30, %v480_v23  ;;  %v608_v10 = vpop.f32.mrf.mxu2 }
 0x19e   :  { %v499_v34 = vadd.f32 %v498_v32, %v497_v27 }
 0x19f   :  { %v483_v35 = vrot.slane %v482_v33, 1 }
 0x1a0   :  { %v500_v36 = vrot.slane %v499_v34, 2 }
 0x1a1   :  { %v484_v37 = vadd.f32 %v483_v35, %v482_v33 }
 0x1a2   :  { %v501_v38 = vadd.f32 %v500_v36, %v499_v34 }
 0x1a3   :  { %v486_v39 = vmul.f32 %v484_v37, %v789_v31 }
 0x1a4   :  { %v502_v41 = vrot.slane %v501_v38, 1 }
 0x1a5   :  { %v490_v43 = vsub.f32 %v466_v60, %v486_v39  ;;  %v489_v44 = vsub.f32 %v465_v16, %v486_v39 }
 0x1a6   :  { %v503_v45 = vadd.f32 %v502_v41, %v501_v38 }
 0x1a7   :  { %v494_v46 = vmul.f32 %v490_v43, %v490_v43  ;;  %v493_v47 = vmul.f32 %v489_v44, %v489_v44 }
 0x1a8   :  { %v513_v48 = vmul.f32 %v503_v45, %v789_v31 }
 0x1a9   :  { %v505_v49 = vsel %vm192_vm3, %v494_v46, 0.0  ;;  %v504_v40 = vsel %vm192_vm3, %v493_v47, 0.0 }
 0x1aa   :  { %v506_v42 = vadd.f32 %v505_v49, %v504_v40  ;;  %v515_v50 = vadd.f32 1e-05, %v513_v48 }
 0x1ac   :  { %v507_v51 = vrot.slane %v506_v42, 4  ;;  %663 = vrsqrt.f32 %v515_v50  ;;  %vm523_vm14 = vweird.f32 %v515_v50 }
 0x1ae   :  { %v508_v52 = vadd.f32 %v507_v51, %v506_v42 }
 0x1b0   :  { %v509_v53 = vrot.slane %v508_v52, 2 }
 0x1b2   :  { %v664_v54 = vpop.eup %663  ;;  %v510_v55 = vadd.f32 %v509_v53, %v508_v52 }
 0x1b3   :  { %v518_v57 = vmul.f32 %v664_v54, %v515_v50  ;;  %vm524_vm13 = vweird.f32 %v664_v54 }
 0x1b4   :  { %v511_v6 = vrot.slane %v510_v55, 1  ;;  %vm525_vm15 = vmor %vm523_vm14, %vm524_vm13 }
 0x1b5   :  { %v519_v59 = vmul.f32 %v664_v54, %v518_v57 }
 0x1b6   :  { %v512_v7 = vadd.f32 %v511_v6, %v510_v55 }
 0x1b7   :  { %v520_v62 = vmul.f32 0.5, %v519_v59 }
 0x1b8   :  { %v514_v63 = vmul.f32 %v512_v7, %v789_v31 }
 0x1b9   :  { %v521_v0 = vsub.f32 1.5, %v520_v62 }
 0x1ba   :  { %v516_v1 = vadd.f32 1e-05, %v514_v63 }
 0x1bb   :  { %v522_v2 = vmul.f32 %v664_v54, %v521_v0 }
 0x1bc   :  { %665 = vrsqrt.f32 %v516_v1  ;;  %vm533_vm1 = vweird.f32 %v516_v1 }
 0x1bd   :  { %v526_v3 = vsel %vm525_vm15, %v664_v54, %v522_v2 }
 0x1be   :  { %v537_v5 = vmul.f32 %v526_v3, %v487_v24  ;;  %v538_v9 = vmul.f32 %v526_v3, %v488_v21  ;;  %v611_v24 = vpop.f32.mrf.mxu2 }
 0x1c0   :  { %v553_v12 = vmul.f32 %v546_v56, %v537_v5  ;;  %v554_v14 = vmul.f32 %v551_v4, %v538_v9 }
 0x1c2   :  { %v666_v16 = vpop.eup %665  ;;  %v569_v17 = vadd.f32 %v562_v11, %v553_v12  ;;  %v570_v18 = vadd.f32 %v567_v15, %v554_v14 }
 0x1c3   :  { %v528_v31 = vmul.f32 %v666_v16, %v516_v1  ;;  %vm534_vm0 = vweird.f32 %v666_v16 }
 0x1c4   :  { %v616_v61 = vadd.f32 %v606_v58, %v569_v17  ;;  %v617_v60 = vadd.f32 %v608_v10, %v570_v18  ;;  %vm535_vm2 = vmor %vm533_vm1, %vm534_vm0 }
 0x1c5   :  { %v529_v8 = vmul.f32 %v666_v16, %v528_v31 }
 0x1c6   :  { %v620_v19 = vmax.f32 %v616_v61, 0.0  ;;  %v621_v20 = vmax.f32 %v617_v60, 0.0  ;;  %v613_v32 = vpop.f32.mrf.mxu2 }
 0x1c7   :  { %v530_v22 = vmul.f32 0.5, %v529_v8 }
 0x1c8   :  { %624 = vst.msk [vmem:[%s908_s8] sm:$0xff] %vm192_vm3, %v620_v19 }
 0x1c9   :  { %v531_v21 = vsub.f32 1.5, %v530_v22  ;;  %625 = vst.msk [vmem:[%s908_s8 + $0x8] sm:$0xff] %vm192_vm3, %v621_v20 }
 0x1cb   :  { %v532_v25 = vmul.f32 %v666_v16, %v531_v21 }
 0x1cd   :  { %v536_v26 = vsel %vm535_vm2, %v666_v16, %v532_v25 }
 0x1ce   :  { %v539_v28 = vmul.f32 %v536_v26, %v489_v44  ;;  %v540_v13 = vmul.f32 %v536_v26, %v490_v43 }
 0x1d0   :  { %v555_v23 = vmul.f32 %v546_v56, %v539_v28  ;;  %v556_v29 = vmul.f32 %v551_v4, %v540_v13 }
 0x1d2   :  { %v571_v27 = vadd.f32 %v562_v11, %v555_v23  ;;  %v572_v30 = vadd.f32 %v567_v15, %v556_v29 }
 0x1d4   :  { %v618_v33 = vadd.f32 %v611_v24, %v571_v27  ;;  %v619_v34 = vadd.f32 %v613_v32, %v572_v30 }
 0x1d6   :  { %v622_v35 = vmax.f32 %v618_v33, 0.0  ;;  %v623_v36 = vmax.f32 %v619_v34, 0.0 }
 0x1d8   :  { %626 = vst.msk [vmem:[%s908_s8 + $0x10] sm:$0xff] %vm192_vm3, %v622_v35 }
 0x1d9   :  { %627 = vst.msk [vmem:[%s908_s8 + $0x18] sm:$0xff] %vm192_vm3, %v623_v36 }

</bundles_post_ra>
